<compile_context>
chip_gen: v7x
topology: tpu7x:2x2x1
jax: 0.10.0
libtpu: 0.0.40
codegen_flags: <defaults>
</compile_context>

<pallas_src>
import functools

import jax
import jax.numpy as jnp
from jax import lax
from jax.experimental import pallas as pl
from jax.experimental.pallas import tpu as pltpu


def boe_kernel(ids_ref, emb_ref, w1_ref, b1_ref, w2_ref, b2_ref,
               wc_ref, bc_ref, out_ref, *, seq_len, inv_seq):
    """One batch tile.

    ids_ref : (TB*S, 1) int32   flattened token ids for this batch tile
    emb_ref : (Vp, Ep)  bf16    zero-padded embedding table
    w*_ref  : bf16 (in, out) padded weights; b*_ref: (1, out) f32 padded biases
    out_ref : (TB, Cp)  f32     lane-dense padded logits
    """
    ts = ids_ref.shape[0]
    vp = emb_ref.shape[0]
    tb = out_ref.shape[0]

    # One-hot over the padded vocab (VPU). Padded vocab columns never match
    # (ids < V <= Vp) and padded batch rows only feed discarded outputs.
    vocab_iota = lax.broadcasted_iota(jnp.int32, (ts, vp), 1)
    onehot = (ids_ref[...] == vocab_iota).astype(jnp.bfloat16)          # (TS, Vp)

    # In-kernel mean-pooling matrix: pool[b, t] = 1/S iff token t belongs to
    # example b of this tile.  Pure iota/compare -> no HBM traffic.
    row = lax.broadcasted_iota(jnp.int32, (tb, ts), 0)
    col = lax.broadcasted_iota(jnp.int32, (tb, ts), 1)
    in_row = (col >= row * seq_len) & (col < (row + 1) * seq_len)
    pool = jnp.where(in_row, inv_seq, 0.0).astype(jnp.bfloat16)         # (TB, TS)

    # counts[b, v] = (1/S) * #occurrences of token v in example b       (MXU)
    counts = jnp.dot(pool, onehot, preferred_element_type=jnp.float32)  # (TB, Vp)
    # x = mean embedding per example                                    (MXU)
    x = jnp.dot(counts.astype(jnp.bfloat16), emb_ref[...],
                preferred_element_type=jnp.float32)                     # (TB, Ep)

    h1 = jnp.dot(x.astype(jnp.bfloat16), w1_ref[...],
                 preferred_element_type=jnp.float32) + b1_ref[...]
    h1 = jnp.maximum(h1, 0.0)                                           # ReLU
    h2 = jnp.dot(h1.astype(jnp.bfloat16), w2_ref[...],
                 preferred_element_type=jnp.float32) + b2_ref[...]
    h2 = jnp.maximum(h2, 0.0)                                           # ReLU
    # TODO(synk): nn.Dropout is identity at inference; training-mode masking
    # not implemented.
    out_ref[...] = jnp.dot(h2.astype(jnp.bfloat16), wc_ref[...],
                           preferred_element_type=jnp.float32) + bc_ref[...]


def _ceil_to(n, m):
    return -(-n // m) * m


def bag_of_embeddings(ids, emb, w1, b1, w2, b2, wc, bc, *, tile_b=8):
    B, S = ids.shape
    V, E = emb.shape
    H = w1.shape[1]
    C = wc.shape[1]

    Bp = _ceil_to(B, tile_b)
    Vp = _ceil_to(V, 128)   # lane-dense one-hot / counts
    Ep = _ceil_to(E, 128)
    Hp = _ceil_to(H, 128)
    Cp = _ceil_to(C, 128)

    # Zero-padded bf16 weights (exact: padded features stay zero through the
    # matmuls and ReLU), f32 biases kept full precision.
    emb_p = jnp.zeros((Vp, Ep), jnp.bfloat16).at[:V, :E].set(emb.astype(jnp.bfloat16))
    w1_p = jnp.zeros((Ep, Hp), jnp.bfloat16).at[:E, :H].set(w1.astype(jnp.bfloat16))
    b1_p = jnp.zeros((1, Hp), jnp.float32).at[0, :H].set(b1)
    w2_p = jnp.zeros((Hp, Hp), jnp.bfloat16).at[:H, :H].set(w2.astype(jnp.bfloat16))
    b2_p = jnp.zeros((1, Hp), jnp.float32).at[0, :H].set(b2)
    wc_p = jnp.zeros((Hp, Cp), jnp.bfloat16).at[:H, :C].set(wc.astype(jnp.bfloat16))
    bc_p = jnp.zeros((1, Cp), jnp.float32).at[0, :C].set(bc)

    # Flatten + pad token ids (padded rows use token 0; their logits are
    # discarded by the slice below).  Long axis on sublanes -> (Bp*S, 1).
    ids_p = jnp.zeros((Bp, S), jnp.int32).at[:B, :].set(ids).reshape(Bp * S, 1)

    ts = tile_b * S
    kernel = functools.partial(boe_kernel, seq_len=S, inv_seq=1.0 / S)

    out_p = pl.pallas_call(
        kernel,
        out_shape=jax.ShapeDtypeStruct((Bp, Cp), jnp.float32),
        grid_spec=pltpu.PrefetchScalarGridSpec(
            num_scalar_prefetch=0,
            grid=(Bp // tile_b,),
            in_specs=[
                pl.BlockSpec((ts, 1), lambda i: (i, 0)),       # ids (per tile)
                pl.BlockSpec((Vp, Ep), lambda i: (0, 0)),      # embedding table
                pl.BlockSpec((Ep, Hp), lambda i: (0, 0)),      # w1
                pl.BlockSpec((1, Hp), lambda i: (0, 0)),       # b1
                pl.BlockSpec((Hp, Hp), lambda i: (0, 0)),      # w2
                pl.BlockSpec((1, Hp), lambda i: (0, 0)),       # b2
                pl.BlockSpec((Hp, Cp), lambda i: (0, 0)),      # wc
                pl.BlockSpec((1, Cp), lambda i: (0, 0)),       # bc
            ],
            out_specs=pl.BlockSpec((tile_b, Cp), lambda i: (i, 0)),
        ),
        compiler_params=pltpu.CompilerParams(
            dimension_semantics=("parallel",)),                # megacore on v7x
    )(ids_p, emb_p, w1_p, b1_p, w2_p, b2_p, wc_p, bc_p)

    return out_p[:B, :C]


def reference(ids, emb, w1, b1, w2, b2, wc, bc):
    x = jnp.mean(emb[ids], axis=1)
    h1 = jnp.maximum(x @ w1 + b1, 0.0)
    h2 = jnp.maximum(h1 @ w2 + b2, 0.0)
    return h2 @ wc + bc


if __name__ == "__main__":
    B, S = 2, 8                  # batch, sequence length
    V, E, H, C = 64, 32, 32, 3   # vocab, emb_dim, hidden_size, num_class

    key = jax.random.PRNGKey(0)
    k_ids, k_emb, k_w1, k_b1, k_w2, k_b2, k_wc, k_bc = jax.random.split(key, 8)

    ids = jax.random.randint(k_ids, (B, S), 0, V, dtype=jnp.int32)
    emb = jax.random.normal(k_emb, (V, E), jnp.float32) * 0.1
    w1 = jax.random.normal(k_w1, (E, H), jnp.float32) * 0.1
    b1 = jax.random.normal(k_b1, (H,), jnp.float32) * 0.1
    w2 = jax.random.normal(k_w2, (H, H), jnp.float32) * 0.1
    b2 = jax.random.normal(k_b2, (H,), jnp.float32) * 0.1
    wc = jax.random.normal(k_wc, (H, C), jnp.float32) * 0.1
    bc = jax.random.normal(k_bc, (C,), jnp.float32) * 0.1

    out = bag_of_embeddings(ids, emb, w1, b1, w2, b2, wc, bc)
    out = jax.block_until_ready(out)

    ref = reference(ids, emb, w1, b1, w2, b2, wc, bc)
    assert out.shape == (B, C), out.shape
    # bf16 matmul inputs (f32 accumulation) -> bf16-level tolerance vs f32 ref.
    assert jnp.allclose(out, ref, atol=1e-2, rtol=1e-2), (out, ref)
    print("KERNEL_OK")
</pallas_src>

<mosaic_0001>
module attributes {stable_mosaic.version = 11 : i64} {
  func.func @boe_kernel(%arg0: i32, %arg1: memref<64x1xi32, #tpu.memory_space<vmem>>, %arg2: memref<128x128xbf16, #tpu.memory_space<vmem>>, %arg3: memref<128x128xbf16, #tpu.memory_space<vmem>>, %arg4: memref<1x128xf32, #tpu.memory_space<vmem>>, %arg5: memref<128x128xbf16, #tpu.memory_space<vmem>>, %arg6: memref<1x128xf32, #tpu.memory_space<vmem>>, %arg7: memref<128x128xbf16, #tpu.memory_space<vmem>>, %arg8: memref<1x128xf32, #tpu.memory_space<vmem>>, %arg9: memref<8x128xf32, #tpu.memory_space<vmem>>) attributes {dimension_semantics = [#tpu.dimension_semantics<parallel>], iteration_bounds = array<i64: 1>, scalar_prefetch = 0 : i64, scratch_operands = 0 : i64, tpu.core_type = #tpu.core_type<tc>, window_params = [{transform_indices = @transform_0, window_bounds = array<i64: 64, 1>}, {pipeline_mode = #tpu.pipeline_mode<synchronous>, transform_indices = @transform_1, window_bounds = array<i64: 128, 128>}, {pipeline_mode = #tpu.pipeline_mode<synchronous>, transform_indices = @transform_2, window_bounds = array<i64: 128, 128>}, {pipeline_mode = #tpu.pipeline_mode<synchronous>, transform_indices = @transform_3, window_bounds = array<i64: 1, 128>}, {pipeline_mode = #tpu.pipeline_mode<synchronous>, transform_indices = @transform_4, window_bounds = array<i64: 128, 128>}, {pipeline_mode = #tpu.pipeline_mode<synchronous>, transform_indices = @transform_5, window_bounds = array<i64: 1, 128>}, {pipeline_mode = #tpu.pipeline_mode<synchronous>, transform_indices = @transform_6, window_bounds = array<i64: 128, 128>}, {pipeline_mode = #tpu.pipeline_mode<synchronous>, transform_indices = @transform_7, window_bounds = array<i64: 1, 128>}, {transform_indices = @transform_8, window_bounds = array<i64: 8, 128>}]} {
    %0 = tpu.iota {dimensions = array<i32: 1>} : vector<64x128xi32>
    %c0 = arith.constant 0 : index
    %c0_0 = arith.constant 0 : index
    %1 = vector.load %arg1[%c0, %c0_0] : memref<64x1xi32, #tpu.memory_space<vmem>>, vector<64x1xi32>
    %2 = vector.broadcast %1 : vector<64x1xi32> to vector<64x128xi32>
    %3 = arith.cmpi eq, %2, %0 : vector<64x128xi32>
    %4 = arith.extui %3 : vector<64x128xi1> to vector<64x128xi32>
    %5 = arith.sitofp %4 : vector<64x128xi32> to vector<64x128xf32>
    %6 = arith.truncf %5 : vector<64x128xf32> to vector<64x128xbf16>
    %7 = tpu.iota {dimensions = array<i32: 0>} : vector<8x64xi32>
    %8 = tpu.iota {dimensions = array<i32: 1>} : vector<8x64xi32>
    %c8_i32 = arith.constant 8 : i32
    %9 = vector.broadcast %c8_i32 : i32 to vector<8x64xi32>
    %10 = arith.muli %7, %9 : vector<8x64xi32>
    %11 = arith.cmpi sge, %8, %10 : vector<8x64xi32>
    %c1_i32 = arith.constant 1 : i32
    %12 = vector.broadcast %c1_i32 : i32 to vector<8x64xi32>
    %13 = arith.addi %7, %12 : vector<8x64xi32>
    %c8_i32_1 = arith.constant 8 : i32
    %14 = vector.broadcast %c8_i32_1 : i32 to vector<8x64xi32>
    %15 = arith.muli %13, %14 : vector<8x64xi32>
    %16 = arith.cmpi slt, %8, %15 : vector<8x64xi32>
    %17 = arith.andi %11, %16 : vector<8x64xi1>
    %cst = arith.constant 1.250000e-01 : f32
    %cst_2 = arith.constant 0.000000e+00 : f32
    %18 = vector.broadcast %cst : f32 to vector<8x64xf32>
    %19 = vector.broadcast %cst_2 : f32 to vector<8x64xf32>
    %20 = arith.select %17, %18, %19 : vector<8x64xi1>, vector<8x64xf32>
    %21 = arith.truncf %20 : vector<8x64xf32> to vector<8x64xbf16>
    %cst_3 = arith.constant dense<0.000000e+00> : vector<8x128xf32>
    %22 = tpu.matmul %21, %6, %cst_3 {dimension_numbers = #tpu.dot_dimension_numbers<[1], [0], [0], [1], [0, 0, 1, 1], [], []>} : vector<8x64xbf16>, vector<64x128xbf16>, vector<8x128xf32> -> vector<8x128xf32>
    %23 = arith.truncf %22 : vector<8x128xf32> to vector<8x128xbf16>
    %c0_4 = arith.constant 0 : index
    %c0_5 = arith.constant 0 : index
    %24 = vector.load %arg2[%c0_4, %c0_5] : memref<128x128xbf16, #tpu.memory_space<vmem>>, vector<128x128xbf16>
    %cst_6 = arith.constant dense<0.000000e+00> : vector<8x128xf32>
    %25 = tpu.matmul %23, %24, %cst_6 {dimension_numbers = #tpu.dot_dimension_numbers<[1], [0], [0], [1], [0, 0, 1, 1], [], []>} : vector<8x128xbf16>, vector<128x128xbf16>, vector<8x128xf32> -> vector<8x128xf32>
    %26 = arith.truncf %25 : vector<8x128xf32> to vector<8x128xbf16>
    %c0_7 = arith.constant 0 : index
    %c0_8 = arith.constant 0 : index
    %27 = vector.load %arg3[%c0_7, %c0_8] : memref<128x128xbf16, #tpu.memory_space<vmem>>, vector<128x128xbf16>
    %cst_9 = arith.constant dense<0.000000e+00> : vector<8x128xf32>
    %28 = tpu.matmul %26, %27, %cst_9 {dimension_numbers = #tpu.dot_dimension_numbers<[1], [0], [0], [1], [0, 0, 1, 1], [], []>} : vector<8x128xbf16>, vector<128x128xbf16>, vector<8x128xf32> -> vector<8x128xf32>
    %c0_10 = arith.constant 0 : index
    %c0_11 = arith.constant 0 : index
    %29 = vector.load %arg4[%c0_10, %c0_11] : memref<1x128xf32, #tpu.memory_space<vmem>>, vector<1x128xf32>
    %30 = vector.broadcast %29 : vector<1x128xf32> to vector<8x128xf32>
    %31 = arith.addf %28, %30 : vector<8x128xf32>
    %cst_12 = arith.constant 0.000000e+00 : f32
    %32 = vector.broadcast %cst_12 : f32 to vector<8x128xf32>
    %33 = arith.maximumf %31, %32 : vector<8x128xf32>
    %34 = arith.truncf %33 : vector<8x128xf32> to vector<8x128xbf16>
    %c0_13 = arith.constant 0 : index
    %c0_14 = arith.constant 0 : index
    %35 = vector.load %arg5[%c0_13, %c0_14] : memref<128x128xbf16, #tpu.memory_space<vmem>>, vector<128x128xbf16>
    %cst_15 = arith.constant dense<0.000000e+00> : vector<8x128xf32>
    %36 = tpu.matmul %34, %35, %cst_15 {dimension_numbers = #tpu.dot_dimension_numbers<[1], [0], [0], [1], [0, 0, 1, 1], [], []>} : vector<8x128xbf16>, vector<128x128xbf16>, vector<8x128xf32> -> vector<8x128xf32>
    %c0_16 = arith.constant 0 : index
    %c0_17 = arith.constant 0 : index
    %37 = vector.load %arg6[%c0_16, %c0_17] : memref<1x128xf32, #tpu.memory_space<vmem>>, vector<1x128xf32>
    %38 = vector.broadcast %37 : vector<1x128xf32> to vector<8x128xf32>
    %39 = arith.addf %36, %38 : vector<8x128xf32>
    %cst_18 = arith.constant 0.000000e+00 : f32
    %40 = vector.broadcast %cst_18 : f32 to vector<8x128xf32>
    %41 = arith.maximumf %39, %40 : vector<8x128xf32>
    %42 = arith.truncf %41 : vector<8x128xf32> to vector<8x128xbf16>
    %c0_19 = arith.constant 0 : index
    %c0_20 = arith.constant 0 : index
    %43 = vector.load %arg7[%c0_19, %c0_20] : memref<128x128xbf16, #tpu.memory_space<vmem>>, vector<128x128xbf16>
    %cst_21 = arith.constant dense<0.000000e+00> : vector<8x128xf32>
    %44 = tpu.matmul %42, %43, %cst_21 {dimension_numbers = #tpu.dot_dimension_numbers<[1], [0], [0], [1], [0, 0, 1, 1], [], []>} : vector<8x128xbf16>, vector<128x128xbf16>, vector<8x128xf32> -> vector<8x128xf32>
    %c0_22 = arith.constant 0 : index
    %c0_23 = arith.constant 0 : index
    %45 = vector.load %arg8[%c0_22, %c0_23] : memref<1x128xf32, #tpu.memory_space<vmem>>, vector<1x128xf32>
    %46 = vector.broadcast %45 : vector<1x128xf32> to vector<8x128xf32>
    %47 = arith.addf %44, %46 : vector<8x128xf32>
    %c0_24 = arith.constant 0 : index
    %c0_25 = arith.constant 0 : index
    %48 = vector.load %arg9[%c0_24, %c0_25] : memref<8x128xf32, #tpu.memory_space<vmem>>, vector<8x128xf32>
    tpu.vector_store %arg9[%c0_24, %c0_25], %47 {strides = array<i32>} : memref<8x128xf32, #tpu.memory_space<vmem>>, vector<8x128xf32>,
    return
  }
  func.func @transform_0(%arg0: i32) -> (i32, i32) {
    %c0_i32 = arith.constant 0 : i32
    %c0_i32_0 = arith.constant 0 : i32
    return %arg0, %c0_i32 : i32, i32
  }
  func.func @transform_1(%arg0: i32) -> (i32, i32) {
    %c0_i32 = arith.constant 0 : i32
    %c0_i32_0 = arith.constant 0 : i32
    %c0_i32_1 = arith.constant 0 : i32
    return %c0_i32, %c0_i32_0 : i32, i32
  }
  func.func @transform_2(%arg0: i32) -> (i32, i32) {
    %c0_i32 = arith.constant 0 : i32
    %c0_i32_0 = arith.constant 0 : i32
    %c0_i32_1 = arith.constant 0 : i32
    return %c0_i32, %c0_i32_0 : i32, i32
  }
  func.func @transform_3(%arg0: i32) -> (i32, i32) {
    %c0_i32 = arith.constant 0 : i32
    %c0_i32_0 = arith.constant 0 : i32
    %c0_i32_1 = arith.constant 0 : i32
    return %c0_i32, %c0_i32_0 : i32, i32
  }
  func.func @transform_4(%arg0: i32) -> (i32, i32) {
    %c0_i32 = arith.constant 0 : i32
    %c0_i32_0 = arith.constant 0 : i32
    %c0_i32_1 = arith.constant 0 : i32
    return %c0_i32, %c0_i32_0 : i32, i32
  }
  func.func @transform_5(%arg0: i32) -> (i32, i32) {
    %c0_i32 = arith.constant 0 : i32
    %c0_i32_0 = arith.constant 0 : i32
    %c0_i32_1 = arith.constant 0 : i32
    return %c0_i32, %c0_i32_0 : i32, i32
  }
  func.func @transform_6(%arg0: i32) -> (i32, i32) {
    %c0_i32 = arith.constant 0 : i32
    %c0_i32_0 = arith.constant 0 : i32
    %c0_i32_1 = arith.constant 0 : i32
    return %c0_i32, %c0_i32_0 : i32, i32
  }
  func.func @transform_7(%arg0: i32) -> (i32, i32) {
    %c0_i32 = arith.constant 0 : i32
    %c0_i32_0 = arith.constant 0 : i32
    %c0_i32_1 = arith.constant 0 : i32
    return %c0_i32, %c0_i32_0 : i32, i32
  }
  func.func @transform_8(%arg0: i32) -> (i32, i32) {
    %c0_i32 = arith.constant 0 : i32
    %c0_i32_0 = arith.constant 0 : i32
    return %arg0, %c0_i32 : i32, i32
  }
}

</mosaic_0001>

<bundles_post_ra>
// kernel: tpu_custom_call.1
= control target key start
LH: loop header
LB: loop body
LE: loop exit
PB: predicated region body
PF: predicated region fallthrough
CT: control target
= control target key end

     0   :  { %13 = vsyncpa [#allocation3], 0  ;;  %s1194_s0 = inlined_call_operand.vmem [shape: s32[64,1], index: 0, kind: input, shape index: {}]   ;;  %s1195_s1 = inlined_call_operand.vmem [shape: bf16[128,128], index: 1, kind: input, shape index: {}]   ;;  %s1196_s2 = inlined_call_operand.hbm [shape: bf16[128,128], index: 2, kind: input, shape index: {}]   ;;  %s1197_s3 = inlined_call_operand.vmem [shape: f32[1,128], index: 3, kind: input, shape index: {}]   ;;  %s1198_s4 = inlined_call_operand.hbm [shape: bf16[128,128], index: 4, kind: input, shape index: {}]   ;;  %s1199_s5 = inlined_call_operand.vmem [shape: f32[1,128], index: 5, kind: input, shape index: {}]   ;;  %s1200_s6 = inlined_call_operand.hbm [shape: bf16[128,128], index: 6, kind: input, shape index: {}]   ;;  %s1201_s7 = inlined_call_operand.vmem [shape: f32[1,128], index: 7, kind: input, shape index: {}]   ;;  %s1202_s8 = inlined_call_operand.hbm [shape: f32[8,128], index: 8, kind: output, shape index: {}]  }
   0x1   :  { %14 = vsyncpa [#allocation6], 0 }
   0x2   :  { %15 = vsyncpa [#allocation4], 0  ;;  %s971_s27 = smov [#allocation5]   ;;  %s972_s29 = smov [#allocation2]  }
   0x3   :  { %s39_s28 = sshll.u32 %s971_s27, 4  ;;  %s25_s30 = sshll.u32 %s972_s29, 4  ;;  %s40_s28 = int_to_ptr.vmem [resolvable:$true] %s39_s28  ;;  %s1026_s30 = int_to_ptr.vmem [resolvable:$true] %s25_s30 }
   0x4   :  { %s877_s11 = scalar_lea.hbm %s1198_s4, 1024 }
   0x5   :  { %p878_p0 = scmp.ne.s32.totalorder %s1198_s4, %s877_s11  ;;  %p881_p1 = scmp.lt.u32.totalorder %s877_s11, %s1198_s4 }
   0x7   :  { %p883_p2 = pnand %p881_p1, %p878_p0 }
   0x9   :  { %886 = shalt.err (!%p883_p2)
}
   0xa   :  { %s887_s16 = scalar_lea.vmem %s40_s28, 1024  ;;  %p892_p4 = scmp.lt.s32.totalorder %s40_s28, %s40_s28 }
   0xb   :  { %p888_p3 = scmp.ne.s32.totalorder %s40_s28, %s887_s16  ;;  %p893_p5 = scmp.lt.s32.totalorder %s887_s16, %s887_s16 }
   0xd   :  { %p894_p6 = por %p893_p5, %p892_p4 }
   0xf   :  { %p895_p7 = pnand %p894_p6, %p888_p3 }
  0x11   :  { %898 = shalt.err (!%p895_p7)
}
  0x12   :  { %s973_s17 = smov 64   ;;  %s974_s18 = smov 4  }
  0x13   :  { %45 = dma.hbm_to_vmem [thread:$0]  %s1198_s4, 1024, %s40_s28, [#allocation6], %s973_s17, %s973_s17, %s974_s18  }
  0x14   :  { %s899_s23 = scalar_lea.hbm %s1196_s2, 1024 }
  0x15   :  { %p900_p8 = scmp.ne.s32.totalorder %s1196_s2, %s899_s23  ;;  %p903_p9 = scmp.lt.u32.totalorder %s899_s23, %s1196_s2 }
  0x17   :  { %p905_p10 = pnand %p903_p9, %p900_p8 }
  0x19   :  { %908 = shalt.err (!%p905_p10)
}
  0x1a   :  { %s909_s29 = scalar_lea.vmem %s1026_s30, 1024  ;;  %p914_p12 = scmp.lt.s32.totalorder %s1026_s30, %s1026_s30 }
  0x1b   :  { %p910_p11 = scmp.ne.s32.totalorder %s1026_s30, %s909_s29  ;;  %p915_p13 = scmp.lt.s32.totalorder %s909_s29, %s909_s29 }
  0x1d   :  { %p916_p0 = por %p915_p13, %p914_p12 }
  0x1f   :  { %p917_p1 = pnand %p916_p0, %p910_p11 }
  0x21   :  { %920 = shalt.err (!%p917_p1)
}
  0x22   :  { %31 = dma.hbm_to_vmem [thread:$0]  %s1196_s2, 1024, %s1026_s30, [#allocation3], %s973_s17, %s973_s17, %s974_s18  }
  0x23   :  { %s975_s9 = smov [#allocation7]   ;;  %s921_s13 = scalar_lea.hbm %s1200_s6, 1024 }
  0x24   :  { %s53_s10 = sshll.u32 %s975_s9, 4  ;;  %p922_p2 = scmp.ne.s32.totalorder %s1200_s6, %s921_s13  ;;  %s54_s10 = int_to_ptr.vmem [resolvable:$true] %s53_s10 }
  0x25   :  { %p925_p3 = scmp.lt.u32.totalorder %s921_s13, %s1200_s6 }
  0x27   :  { %p927_p4 = pnand %p925_p3, %p922_p2 }
  0x29   :  { %930 = shalt.err (!%p927_p4)
}
  0x2a   :  { %s931_s20 = scalar_lea.vmem %s54_s10, 1024  ;;  %p936_p6 = scmp.lt.s32.totalorder %s54_s10, %s54_s10 }
  0x2b   :  { %p932_p5 = scmp.ne.s32.totalorder %s54_s10, %s931_s20  ;;  %p937_p7 = scmp.lt.s32.totalorder %s931_s20, %s931_s20 }
  0x2d   :  { %p938_p8 = por %p937_p7, %p936_p6 }
  0x2f   :  { %p939_p9 = pnand %p938_p8, %p932_p5 }
  0x31   :  { %942 = shalt.err (!%p939_p9)
}
  0x32   :  { %59 = dma.hbm_to_vmem [thread:$0]  %s1200_s6, 1024, %s54_s10, [#allocation6], %s973_s17, %s973_s17, %s974_s18  }
  0x33   :  { %965 = dma.done.wait [#allocation3], 1024  }
  0x34   :  { %966 = vsyncadd [#allocation3], 4294966272 }
  0x35   :  { %967 = dma.done.wait [#allocation6], 2048  }
  0x36   :  { %968 = vsyncadd [#allocation6], 4294965248  ;;  %v976_v0 = vmov 0   ;;  %v76_v1 = vld [vmem:[%s1194_s0 + $0x10] sm:$0xff]  ;;  %v74_v2 = vld [vmem:[%s1194_s0] sm:$0xff]  ;;  %v977_v7 = vmov 0.0   ;;  %v72_v17 = vlaneseq }
  0x37   :  { %844 = vset.pattern.permute.xlu1 %v976_v0  ;;  %843 = vset.pattern.permute.xlu0 %v976_v0  ;;  %v77_v3 = vld [vmem:[%s1194_s0 + $0x18] sm:$0xff]  ;;  %v75_v4 = vld [vmem:[%s1194_s0 + $0x8] sm:$0xff]  ;;  %v78_v6 = vld [vmem:[%s1194_s0 + $0x20] sm:$0xff]  ;;  %vm978_vm0 = vmmov 0   ;;  %v979_v27 = vmov 1.0|1.0  }
  0x38   :  { %89 = vperm.xlu1 %844, %v76_v1   ;;  %83 = vperm.xlu0 %843, %v74_v2   ;;  %v79_v5 = vld [vmem:[%s1194_s0 + $0x28] sm:$0xff]  ;;  %v81_v8 = vld [vmem:[%s1194_s0 + $0x38] sm:$0xff]  ;;  %v80_v9 = vld [vmem:[%s1194_s0 + $0x30] sm:$0xff]  ;;  %v135_v18 = vshrl.u32 %v72_v17, 7  ;;  %v73_v21 = vand.u32 127, %v72_v17  ;;  %s980_s29 = smov [#allocation8]  }
  0x39   :  { %741 = vmatprep.subr.bf16.mxu0 %v977_v7  ;;  %753 = vmatprep.subr.bf16.mxu1 %v977_v7  ;;  %v845_v10 = vld [vmem:[%s1195_s1] sm:$0xff]   ;;  %v846_v11 = vld [vmem:[%s1195_s1 + $0x8] sm:$0xff]   ;;  %v847_v12 = vld [vmem:[%s1195_s1 + $0x10] sm:$0xff]   ;;  %s638_s4 = sshll.u32 %s980_s29, 4  ;;  %s639_s4 = int_to_ptr.vmem [resolvable:$true] %s638_s4 }
  0x3a   :  { %749 = vmatprep.mubr.msk.bf16.mxu0 %vm978_vm0, %v977_v7  ;;  %769 = vmatprep.mubr.msk.bf16.mxu1 %vm978_vm0, %v977_v7  ;;  %v848_v13 = vld [vmem:[%s1195_s1 + $0x18] sm:$0xff]   ;;  %v849_v14 = vld [vmem:[%s1195_s1 + $0x20] sm:$0xff]   ;;  %v850_v15 = vld [vmem:[%s1195_s1 + $0x28] sm:$0xff]   ;;  %v138_v22 = vadd.s32 1, %v135_v18  ;;  %v136_v25 = vmul.u32 8, %v135_v18  ;;  %p948_p11 = scmp.lt.s32.totalorder %s639_s4, %s639_s4 }
  0x3b   :  { %754 = vmatpush3.bf16.msra.mxu1 %v845_v10  ;;  %v851_v16 = vld [vmem:[%s1195_s1 + $0x30] sm:$0xff]   ;;  %v852_v34 = vld [vmem:[%s1195_s1 + $0x38] sm:$0xff]   ;;  %v853_v35 = vld [vmem:[#allocation2] sm:$0xff]  }
  0x3c   :  { %92 = vperm.xlu1 %844, %v77_v3   ;;  %86 = vperm.xlu0 %843, %v75_v4   ;;  %v139_v26 = vmul.u32 8, %v138_v22  ;;  %vm137_vm6 = vcmp.ge.s32.totalorder %v73_v21, %v136_v25  ;;  %v854_v36 = vld [vmem:[#allocation2 + $0x8] sm:$0xff]   ;;  %v855_v37 = vld [vmem:[#allocation2 + $0x10] sm:$0xff]   ;;  %v856_v38 = vld [vmem:[#allocation2 + $0x18] sm:$0xff]  }
  0x3d   :  { %755 = vmatprep.subr.bf16.mxu1 %v977_v7  ;;  %v857_v39 = vld [vmem:[#allocation2 + $0x20] sm:$0xff]   ;;  %v858_v40 = vld [vmem:[#allocation2 + $0x28] sm:$0xff]   ;;  %v859_v41 = vld [vmem:[#allocation2 + $0x30] sm:$0xff]  }
  0x3e   :  { %vm140_vm7 = vcmp.lt.s32.totalorder %v73_v21, %v139_v26  ;;  %v860_v47 = vld [vmem:[#allocation2 + $0x38] sm:$0xff]   ;;  %v861_v48 = vld [vmem:[#allocation5] sm:$0xff]   ;;  %v862_v49 = vld [vmem:[#allocation5 + $0x8] sm:$0xff]  }
  0x3f   :  { %756 = vmatpush3.bf16.msra.mxu1 %v846_v11  ;;  %vm141_vm11 = vmand %vm137_vm6, %vm140_vm7  ;;  %v863_v50 = vld [vmem:[#allocation5 + $0x10] sm:$0xff]   ;;  %v864_v51 = vld [vmem:[#allocation5 + $0x18] sm:$0xff]  }
  0x40   :  { %98 = vperm.xlu1 %844, %v79_v5   ;;  %95 = vperm.xlu0 %843, %v78_v6   ;;  %v142_v32 = vsel %vm141_vm11, 0.125, %v977_v7  ;;  %v865_v52 = vld [vmem:[#allocation5 + $0x20] sm:$0xff]   ;;  %v866_v53 = vld [vmem:[#allocation5 + $0x28] sm:$0xff]   ;;  %v867_v59 = vld [vmem:[#allocation5 + $0x30] sm:$0xff]  }
  0x41   :  { %757 = vmatprep.subr.bf16.mxu1 %v977_v7  ;;  %v143_v33 = vpack.c.bf16 %v142_v32, %v142_v32  ;;  %v868_v60 = vld [vmem:[#allocation5 + $0x38] sm:$0xff]   ;;  %v869_v61 = vld [vmem:[#allocation7] sm:$0xff]   ;;  %v870_v62 = vld [vmem:[#allocation7 + $0x8] sm:$0xff]  }
  0x42   :  { %v871_v63 = vld [vmem:[#allocation7 + $0x10] sm:$0xff]   ;;  %v872_v0 = vld [vmem:[#allocation7 + $0x18] sm:$0xff]   ;;  %v873_v1 = vld [vmem:[#allocation7 + $0x20] sm:$0xff]  }
  0x43   :  { %758 = vmatpush3.bf16.msra.mxu1 %v847_v12  ;;  %v874_v2 = vld [vmem:[#allocation7 + $0x28] sm:$0xff]   ;;  %v673_v3 = vld [vmem:[%s1197_s3] ss:$0 sm:$0xff]  ;;  %v875_v12 = vld [vmem:[#allocation7 + $0x30] sm:$0xff]  }
  0x44   :  { %104 = vperm.xlu1 %844, %v81_v8   ;;  %101 = vperm.xlu0 %843, %v80_v9   ;;  %v691_v22 = vld [vmem:[%s1201_s7] ss:$0 sm:$0xff] }
  0x45   :  { %759 = vmatprep.subr.bf16.mxu1 %v977_v7 }
  0x47   :  { %760 = vmatpush3.bf16.msra.mxu1 %v848_v13  ;;  %v876_v13 = vld [vmem:[#allocation7 + $0x38] sm:$0xff]  }
  0x48   :  { %761 = vmatprep.subr.bf16.mxu1 %v977_v7 }
  0x4b   :  { %762 = vmatpush3.bf16.msra.mxu1 %v849_v14  ;;  %v682_v14 = vld [vmem:[%s1199_s5] ss:$0 sm:$0xff]  ;;  %s943_s5 = scalar_lea.vmem %s639_s4, 128 }
  0x4c   :  { %763 = vmatprep.subr.bf16.mxu1 %v977_v7  ;;  %p944_p10 = scmp.ne.s32.totalorder %s639_s4, %s943_s5  ;;  %p949_p12 = scmp.lt.s32.totalorder %s943_s5, %s943_s5 }
  0x4e   :  { %p950_p13 = por %p949_p12, %p948_p11 }
  0x4f   :  { %764 = vmatpush3.bf16.msra.mxu1 %v850_v15 }
  0x50   :  { %765 = vmatprep.subr.bf16.mxu1 %v977_v7  ;;  %p951_p0 = pnand %p950_p13, %p944_p10 }
  0x53   :  { %766 = vmatpush3.bf16.msra.mxu1 %v851_v16 }
  0x54   :  { %767 = vmatprep.subr.bf16.mxu1 %v977_v7 }
  0x57   :  { %768 = vmatpush3.bf16.msra.mxu1 %v852_v34 }
  0x58   :  { %793 = vmatprep.subr.bf16.mxu1 %v977_v7 }
  0xb7   :  { %v90_v19 = vpop.permute.xlu1 %89  ;;  %v84_v20 = vpop.permute.xlu0 %83 }
  0xb8   :  { %vm106_vm2 = vcmp.eq.s32.totalorder %v84_v20, %v73_v21  ;;  %vm108_vm4 = vcmp.eq.s32.totalorder %v90_v19, %v73_v21 }
  0xbb   :  { %v93_v23 = vpop.permute.xlu1 %92  ;;  %v87_v24 = vpop.permute.xlu0 %86 }
  0xbc   :  { %vm107_vm1 = vcmp.eq.s32.totalorder %v87_v24, %v73_v21  ;;  %vm109_vm5 = vcmp.eq.s32.totalorder %v93_v23, %v73_v21 }
  0xbd   :  { %vm656_vm3 = vmpackc.low %vm107_vm1, %vm106_vm2  ;;  %vm144_vm1 = vcmask 523264  }
  0xbe   :  { %742 = vmatpush3.bf16.msk.msra.mxu0 %vm656_vm3, %v979_v27  ;;  %vm658_vm8 = vmpackc.low %vm109_vm5, %vm108_vm4 }
  0xbf   :  { %v99_v28 = vpop.permute.xlu1 %98  ;;  %v96_v29 = vpop.permute.xlu0 %95  ;;  %743 = vmatprep.subr.bf16.mxu0 %v977_v7 }
  0xc0   :  { %vm111_vm9 = vcmp.eq.s32.totalorder %v99_v28, %v73_v21  ;;  %vm110_vm10 = vcmp.eq.s32.totalorder %v96_v29, %v73_v21 }
  0xc1   :  { %vm660_vm12 = vmpackc.low %vm111_vm9, %vm110_vm10 }
  0xc2   :  { %744 = vmatpush3.bf16.msk.msra.mxu0 %vm658_vm8, %v979_v27 }
  0xc3   :  { %v105_v30 = vpop.permute.xlu1 %104  ;;  %v102_v31 = vpop.permute.xlu0 %101  ;;  %745 = vmatprep.subr.bf16.mxu0 %v977_v7 }
  0xc4   :  { %vm113_vm13 = vcmp.eq.s32.totalorder %v105_v30, %v73_v21  ;;  %vm112_vm14 = vcmp.eq.s32.totalorder %v102_v31, %v73_v21 }
  0xc5   :  { %vm662_vm15 = vmpackc.low %vm113_vm13, %vm112_vm14 }
  0xc6   :  { %746 = vmatpush3.bf16.msk.msra.mxu0 %vm660_vm12, %v979_v27 }
  0xc7   :  { %747 = vmatprep.subr.bf16.mxu0 %v977_v7 }
  0xca   :  { %748 = vmatpush3.bf16.msk.msra.mxu0 %vm662_vm15, %v979_v27 }
  0xcb   :  { %773 = vmatprep.subr.bf16.mxu0 %v977_v7 }
  0xcd   :  { %750 = vmatmul.mubr.msk.bf16.vlgmr.msra.gmra.mrb[0].mxu0 %vm144_vm1, %v143_v33 }
  0xce   :  { %789 = vmatprep.mubr.msk.bf16.mxu0 %vm978_vm0, %v977_v7  ;;  %774 = vmatpush3.bf16.msra.mxu0 %v853_v35 }
  0xcf   :  { %775 = vmatprep.subr.bf16.mxu0 %v977_v7 }
  0xd2   :  { %776 = vmatpush3.bf16.msra.mxu0 %v854_v36 }
  0xd3   :  { %777 = vmatprep.subr.bf16.mxu0 %v977_v7 }
  0xd6   :  { %778 = vmatpush3.bf16.msra.mxu0 %v855_v37 }
  0xd7   :  { %779 = vmatprep.subr.bf16.mxu0 %v977_v7 }
  0xda   :  { %780 = vmatpush3.bf16.msra.mxu0 %v856_v38 }
  0xdb   :  { %781 = vmatprep.subr.bf16.mxu0 %v977_v7 }
  0xde   :  { %782 = vmatpush3.bf16.msra.mxu0 %v857_v39 }
  0xdf   :  { %783 = vmatprep.subr.bf16.mxu0 %v977_v7 }
  0xe2   :  { %784 = vmatpush3.bf16.msra.mxu0 %v858_v40 }
  0xe3   :  { %785 = vmatprep.subr.bf16.mxu0 %v977_v7 }
  0xe6   :  { %786 = vmatpush3.bf16.msra.mxu0 %v859_v41 }
  0xe7   :  { %787 = vmatprep.subr.bf16.mxu0 %v977_v7 }
  0xea   :  { %788 = vmatpush3.bf16.msra.mxu0 %v860_v47 }
  0xeb   :  { %813 = vmatprep.subr.bf16.mxu0 %v977_v7 }
 0x1a0   :  { %v182_v42 = vpop.f32.mrb[0].mxu0 }
 0x1a1   :  { %v188_v43 = vpack.c.bf16 %v182_v42, %v182_v42  ;;  %v751_v44 = vpop.f32.mrb[1].mxu0 }
 0x1a2   :  { %v185_v45 = vpop.f32.mrb[2].mxu0 }
 0x1a3   :  { %v752_v46 = vpop.f32.mrb[3].mxu0  ;;  %770 = vmatmul.mubr.bf16.vlgmr.msra.gmra.mrb[0].mxu1 %v188_v43 }
 0x1a4   :  { %809 = vmatprep.mubr.msk.bf16.mxu1 %vm978_vm0, %v977_v7  ;;  %794 = vmatpush3.bf16.msra.mxu1 %v861_v48 }
 0x1a5   :  { %795 = vmatprep.subr.bf16.mxu1 %v977_v7 }
 0x1a8   :  { %796 = vmatpush3.bf16.msra.mxu1 %v862_v49 }
 0x1a9   :  { %797 = vmatprep.subr.bf16.mxu1 %v977_v7 }
 0x1ac   :  { %798 = vmatpush3.bf16.msra.mxu1 %v863_v50 }
 0x1ad   :  { %799 = vmatprep.subr.bf16.mxu1 %v977_v7 }
 0x1b0   :  { %800 = vmatpush3.bf16.msra.mxu1 %v864_v51 }
 0x1b1   :  { %801 = vmatprep.subr.bf16.mxu1 %v977_v7 }
 0x1b4   :  { %802 = vmatpush3.bf16.msra.mxu1 %v865_v52 }
 0x1b5   :  { %803 = vmatprep.subr.bf16.mxu1 %v977_v7 }
 0x1b8   :  { %804 = vmatpush3.bf16.msra.mxu1 %v866_v53 }
 0x1b9   :  { %805 = vmatprep.subr.bf16.mxu1 %v977_v7 }
 0x1bc   :  { %806 = vmatpush3.bf16.msra.mxu1 %v867_v59 }
 0x1bd   :  { %807 = vmatprep.subr.bf16.mxu1 %v977_v7 }
 0x1c0   :  { %808 = vmatpush3.bf16.msra.mxu1 %v868_v60 }
 0x276   :  { %v287_v54 = vpop.f32.mrb[0].mxu1 }
 0x277   :  { %v293_v55 = vpack.c.bf16 %v287_v54, %v287_v54  ;;  %v771_v56 = vpop.f32.mrb[1].mxu1 }
 0x278   :  { %v290_v57 = vpop.f32.mrb[2].mxu1 }
 0x279   :  { %v772_v58 = vpop.f32.mrb[3].mxu1  ;;  %790 = vmatmul.mubr.bf16.vlgmr.msra.gmra.mrb[4].mxu0 %v293_v55 }
 0x27a   :  { %829 = vmatprep.mubr.msk.bf16.mxu0 %vm978_vm0, %v977_v7  ;;  %814 = vmatpush3.bf16.msra.mxu0 %v869_v61 }
 0x27b   :  { %815 = vmatprep.subr.bf16.mxu0 %v977_v7 }
 0x27e   :  { %816 = vmatpush3.bf16.msra.mxu0 %v870_v62 }
 0x27f   :  { %817 = vmatprep.subr.bf16.mxu0 %v977_v7 }
 0x282   :  { %818 = vmatpush3.bf16.msra.mxu0 %v871_v63 }
 0x283   :  { %819 = vmatprep.subr.bf16.mxu0 %v977_v7 }
 0x286   :  { %820 = vmatpush3.bf16.msra.mxu0 %v872_v0 }
 0x287   :  { %821 = vmatprep.subr.bf16.mxu0 %v977_v7 }
 0x28a   :  { %822 = vmatpush3.bf16.msra.mxu0 %v873_v1 }
 0x28b   :  { %823 = vmatprep.subr.bf16.mxu0 %v977_v7 }
 0x28e   :  { %824 = vmatpush3.bf16.msra.mxu0 %v874_v2 }
 0x28f   :  { %825 = vmatprep.subr.bf16.mxu0 %v977_v7 }
 0x292   :  { %826 = vmatpush3.bf16.msra.mxu0 %v875_v12 }
 0x293   :  { %827 = vmatprep.subr.bf16.mxu0 %v977_v7 }
 0x296   :  { %828 = vmatpush3.bf16.msra.mxu0 %v876_v13 }
 0x34c   :  { %v399_v4 = vpop.f32.mrb[4].mxu0 }
 0x34d   :  { %v400_v5 = vadd.f32 %v673_v3, %v399_v4  ;;  %v791_v6 = vpop.f32.mrb[5].mxu0 }
 0x34e   :  { %v402_v8 = vpop.f32.mrb[6].mxu0 }
 0x34f   :  { %v405_v9 = vmax.f32 %v400_v5, 0.0  ;;  %v792_v10 = vpop.f32.mrb[7].mxu0 }
 0x351   :  { %v406_v11 = vpack.c.bf16 %v405_v9, %v405_v9 }
 0x353   :  { %810 = vmatmul.mubr.bf16.vlgmr.msra.gmra.mrb[4].mxu1 %v406_v11 }
 0x426   :  { %v512_v15 = vpop.f32.mrb[4].mxu1 }
 0x427   :  { %v513_v16 = vadd.f32 %v682_v14, %v512_v15  ;;  %v811_v17 = vpop.f32.mrb[5].mxu1 }
 0x428   :  { %v515_v18 = vpop.f32.mrb[6].mxu1 }
 0x429   :  { %v518_v19 = vmax.f32 %v513_v16, 0.0  ;;  %v812_v20 = vpop.f32.mrb[7].mxu1 }
 0x42b   :  { %v519_v21 = vpack.c.bf16 %v518_v19, %v518_v19 }
 0x42d   :  { %830 = vmatmul.mubr.bf16.vlgmr.msra.gmra.mrb[8].mxu0 %v519_v21 }
 0x500   :  { %v625_v7 = vpop.f32.mrb[8].mxu0 }
 0x501   :  { %v626_v23 = vadd.f32 %v691_v22, %v625_v7  ;;  %v831_v24 = vpop.f32.mrb[9].mxu0 }
 0x502   :  { %v628_v25 = vpop.f32.mrb[10].mxu0 }
 0x503   :  { %631 = vst [vmem:[#allocation8] sm:$0xff] %v626_v23  ;;  %v832_v26 = vpop.f32.mrb[11].mxu0 }
 0x504   :  { %954 = shalt.err (!%p951_p0)
}
 0x505   :  { %s955_s7 = scalar_lea.hbm %s1202_s8, 128 }
 0x506   :  { %p956_p1 = scmp.ne.s32.totalorder %s1202_s8, %s955_s7  ;;  %p959_p2 = scmp.lt.u32.totalorder %s955_s7, %s1202_s8 }
 0x508   :  { %p961_p3 = pnand %p959_p2, %p956_p1 }
 0x50a   :  { %964 = shalt.err (!%p961_p3)
}
 0x50b   :  { %641 = dma.vmem_to_hbm [thread:$0]  %s639_s4, 128, %s1202_s8, [#allocation4]  }
 0x50c   :  { %969 = dma.done.wait [#allocation4], 128  }
 0x50d   :  { %970 = vsyncadd [#allocation4], 4294967168 }
 0x50e   :  { %645 = vsyncpa [#allocation3], 1 }
 0x50f   :  { %646 = vsyncpa [#allocation6], 1 }
 0x510   :  { %647 = vsyncpa [#allocation4], 1 }

</bundles_post_ra>
